<compile_context>
chip_gen: v7x
topology: tpu7x:2x2x1
jax: 0.10.0
libtpu: 0.0.40
codegen_flags: <defaults>
</compile_context>

<pallas_src>
import jax
import jax.numpy as jnp
from jax.experimental import pallas as pl
from jax.experimental.pallas import tpu as pltpu


def _round_up(x: int, m: int) -> int:
    return (x + m - 1) // m * m


def _cdiv(a: int, b: int) -> int:
    return -(-a // b)


# ---------------------------------------------------------------------------
# Kernels
# ---------------------------------------------------------------------------
def _proj_kernel_whole_k(x_ref, w_ref, b_ref, o_ref):
    # Single K step: fused dot + bias + cast, no accumulator round-trip.
    x = x_ref[...].astype(jnp.bfloat16)
    w = w_ref[...].astype(jnp.bfloat16)
    o_ref[...] = (
        jnp.dot(x, w, preferred_element_type=jnp.float32) + b_ref[...]
    ).astype(o_ref.dtype)


def _proj_kernel_tiled_k(x_ref, w_ref, b_ref, o_ref, acc_ref):
    # K is tiled: f32 VMEM accumulator, init on k==0, finalize on last k.
    k = pl.program_id(2)

    @pl.when(k == 0)
    def _():
        acc_ref[...] = jnp.zeros_like(acc_ref)

    acc_ref[...] += jnp.dot(
        x_ref[...].astype(jnp.bfloat16),
        w_ref[...].astype(jnp.bfloat16),
        preferred_element_type=jnp.float32,
    )

    @pl.when(k == pl.num_programs(2) - 1)
    def _():
        o_ref[...] = (acc_ref[...] + b_ref[...]).astype(o_ref.dtype)


# ---------------------------------------------------------------------------
# Wrapper
# ---------------------------------------------------------------------------
def span_projection(x2d, weight, bias, *, out_dtype=None):
    """(M, H) @ (H, N) + (1, N) -> (M, N) via a tiled, pipelined Pallas GEMM."""
    M, H = x2d.shape
    H_w, N = weight.shape
    assert H == H_w
    assert bias.shape == (1, N)

    out_dtype = x2d.dtype if out_dtype is None else jnp.dtype(out_dtype)
    out_bytes = jnp.dtype(out_dtype).itemsize
    x_bytes = jnp.dtype(x2d.dtype).itemsize

    TM_MAX, TN_MAX, TK_TILE = 512, 512, 512
    VMEM_BUDGET = 40 * 1024 * 1024  # conservative for v7x's 64 MiB/TC
    VMEM_LIMIT = 48 * 1024 * 1024

    # --- M tiling: balance tile sizes to bound padding waste; make the tile
    # --- count even when split so v7x's two TensorCores share work evenly.
    n_m = _cdiv(M, TM_MAX)
    if n_m > 1 and n_m % 2 == 1:
        n_m += 1
    TM = _round_up(_cdiv(M, n_m), 16)
    M_pad = n_m * TM

    N_pad = _round_up(N, 128)

    def vmem_est(tm, tn, tk, with_acc):
        x_buf = 2 * tm * tk * x_bytes       # activations (native dtype), 2 bufs
        w_buf = 2 * tk * tn * 2             # bf16 weight, 2 bufs
        o_buf = 2 * tm * tn * out_bytes     # output tile, 2 bufs
        b_buf = 2 * tn * 4                  # bias
        acc = tm * tn * 4 if with_acc else 0
        return x_buf + w_buf + o_buf + b_buf + acc

    if vmem_est(TM, N_pad, H, False) <= VMEM_BUDGET:
        # Weight-resident, X-read-once: whole K, whole N.
        TN, TK, n_n, n_k = N_pad, H, 1, 1
    elif vmem_est(TM, TN_MAX, H, False) <= VMEM_BUDGET:
        # Whole K, tiled N (no accumulator needed).
        n_n = _cdiv(N_pad, TN_MAX)
        TN = _round_up(_cdiv(N_pad, n_n), 128)
        TK, n_k = H, 1
    else:
        # Very large H: tile K too, accumulate in f32 VMEM scratch.
        n_n = _cdiv(N_pad, TN_MAX)
        TN = _round_up(_cdiv(N_pad, n_n), 128)
        TK = TK_TILE
        n_k = _cdiv(H, TK)

    N_pad = n_n * TN
    H_pad = n_k * TK if n_k > 1 else H

    # --- Pad only when needed (no-op for tile-aligned shapes). Activations are
    # --- passed in their native dtype and cast to bf16 inside the kernel.
    x_p = x2d
    if (M_pad, H_pad) != (M, H):
        x_p = jnp.pad(x2d, ((0, M_pad - M), (0, H_pad - H)))
    w_p = weight.astype(jnp.bfloat16)
    if (H_pad, N_pad) != (H, N):
        w_p = jnp.pad(w_p, ((0, H_pad - H), (0, N_pad - N)))
    b_p = bias.astype(jnp.float32)
    if N_pad != N:
        b_p = jnp.pad(b_p, ((0, 0), (0, N_pad - N)))

    if n_k == 1:
        # Fast path: single K step, no accumulator scratch.
        out_pad = pl.pallas_call(
            _proj_kernel_whole_k,
            out_shape=jax.ShapeDtypeStruct((M_pad, N_pad), out_dtype),
            grid_spec=pltpu.PrefetchScalarGridSpec(
                num_scalar_prefetch=0,
                grid=(n_n, n_m),
                in_specs=[
                    pl.BlockSpec((TM, TK), lambda j, i: (i, 0)),  # activations
                    pl.BlockSpec((TK, TN), lambda j, i: (0, j)),  # weight
                    pl.BlockSpec((1, TN), lambda j, i: (0, j)),   # bias
                ],
                out_specs=pl.BlockSpec((TM, TN), lambda j, i: (i, j)),
            ),
            compiler_params=pltpu.CompilerParams(
                dimension_semantics=("parallel", "parallel"),
                vmem_limit_bytes=VMEM_LIMIT,
            ),
        )(x_p, w_p, b_p)
    else:
        out_pad = pl.pallas_call(
            _proj_kernel_tiled_k,
            out_shape=jax.ShapeDtypeStruct((M_pad, N_pad), out_dtype),
            grid_spec=pltpu.PrefetchScalarGridSpec(
                num_scalar_prefetch=0,
                grid=(n_n, n_m, n_k),
                in_specs=[
                    pl.BlockSpec((TM, TK), lambda j, i, k: (i, k)),
                    pl.BlockSpec((TK, TN), lambda j, i, k: (k, j)),
                    pl.BlockSpec((1, TN), lambda j, i, k: (0, j)),
                ],
                out_specs=pl.BlockSpec((TM, TN), lambda j, i, k: (i, j)),
                scratch_shapes=[pltpu.VMEM((TM, TN), jnp.float32)],
            ),
            compiler_params=pltpu.CompilerParams(
                dimension_semantics=("parallel", "parallel", "arbitrary"),
                vmem_limit_bytes=VMEM_LIMIT,
            ),
        )(x_p, w_p, b_p)

    if (M_pad, N_pad) != (M, N):
        out_pad = out_pad[:M, :N]
    return out_pad


# ---------------------------------------------------------------------------
# Module
# ---------------------------------------------------------------------------
class SpanClassifierPallas:
    """JAX/Pallas counterpart of SpanClassifier (concrete projection forward)."""

    def __init__(self, hidden_dim: int, dropout: float, key):
        self.hidden_dim = hidden_dim
        self.dropout_prob = dropout  # eval-mode forward: dropout is identity
        kw, kb = jax.random.split(key)
        self.weight = (
            jax.random.normal(kw, (hidden_dim, 2 * hidden_dim), dtype=jnp.float32)
            * (1.0 / jnp.sqrt(hidden_dim))
        )
        self.bias = (
            jax.random.normal(kb, (1, 2 * hidden_dim), dtype=jnp.float32) * 0.01
        )

    def get_output_dim(self):
        return self.hidden_dim * 2

    def get_input_dim(self):
        return self.hidden_dim

    def forward(self, encoded: jnp.ndarray) -> jnp.ndarray:
        # encoded: (B, S, H) -> (B, S, 2H)
        B, S, H = encoded.shape
        assert H == self.hidden_dim
        x2d = encoded.reshape(B * S, H)
        out2d = span_projection(x2d, self.weight, self.bias)
        return out2d.reshape(B, S, 2 * H)

    __call__ = forward


if __name__ == "__main__":
    key = jax.random.PRNGKey(0)
    k_param, k_in = jax.random.split(key)

    batch, seq, hidden = 2, 8, 32
    module = SpanClassifierPallas(hidden_dim=hidden, dropout=0.1, key=k_param)

    encoded = jax.random.normal(k_in, (batch, seq, hidden), dtype=jnp.float32)

    out = module(encoded)
    out = jax.block_until_ready(out)

    # Contract / shape check.
    assert out.shape == (batch, seq, module.get_output_dim())

    # Reference with the same bf16 operand quantization (f32 accumulate).
    xb = encoded.reshape(-1, hidden).astype(jnp.bfloat16).astype(jnp.float32)
    wb = module.weight.astype(jnp.bfloat16).astype(jnp.float32)
    ref = (xb @ wb + module.bias).reshape(batch, seq, 2 * hidden)
    assert jnp.allclose(out, ref, atol=1e-3, rtol=1e-3)

    print("KERNEL_OK")
</pallas_src>

<mosaic_0001>
module attributes {stable_mosaic.version = 11 : i64} {
  func.func @_proj_kernel_whole_k(%arg0: i32, %arg1: i32, %arg2: memref<16x32xf32, #tpu.memory_space<vmem>>, %arg3: memref<32x128xbf16, #tpu.memory_space<vmem>>, %arg4: memref<1x128xf32, #tpu.memory_space<vmem>>, %arg5: memref<16x128xf32, #tpu.memory_space<vmem>>) attributes {dimension_semantics = [#tpu.dimension_semantics<parallel>, #tpu.dimension_semantics<parallel>], iteration_bounds = array<i64: 1, 1>, scalar_prefetch = 0 : i64, scratch_operands = 0 : i64, tpu.core_type = #tpu.core_type<tc>, window_params = [{transform_indices = @transform_0, window_bounds = array<i64: 16, 32>}, {transform_indices = @transform_1, window_bounds = array<i64: 32, 128>}, {transform_indices = @transform_2, window_bounds = array<i64: 1, 128>}, {transform_indices = @transform_3, window_bounds = array<i64: 16, 128>}]} {
    %c0 = arith.constant 0 : index
    %c0_0 = arith.constant 0 : index
    %0 = vector.load %arg2[%c0, %c0_0] : memref<16x32xf32, #tpu.memory_space<vmem>>, vector<16x32xf32>
    %1 = arith.truncf %0 : vector<16x32xf32> to vector<16x32xbf16>
    %c0_1 = arith.constant 0 : index
    %c0_2 = arith.constant 0 : index
    %2 = vector.load %arg3[%c0_1, %c0_2] : memref<32x128xbf16, #tpu.memory_space<vmem>>, vector<32x128xbf16>
    %cst = arith.constant dense<0.000000e+00> : vector<16x128xf32>
    %3 = tpu.matmul %1, %2, %cst {dimension_numbers = #tpu.dot_dimension_numbers<[1], [0], [0], [1], [0, 0, 1, 1], [], []>} : vector<16x32xbf16>, vector<32x128xbf16>, vector<16x128xf32> -> vector<16x128xf32>
    %c0_3 = arith.constant 0 : index
    %c0_4 = arith.constant 0 : index
    %4 = vector.load %arg4[%c0_3, %c0_4] : memref<1x128xf32, #tpu.memory_space<vmem>>, vector<1x128xf32>
    %5 = vector.broadcast %4 : vector<1x128xf32> to vector<16x128xf32>
    %6 = arith.addf %3, %5 : vector<16x128xf32>
    %c0_5 = arith.constant 0 : index
    %c0_6 = arith.constant 0 : index
    %7 = vector.load %arg5[%c0_5, %c0_6] : memref<16x128xf32, #tpu.memory_space<vmem>>, vector<16x128xf32>
    tpu.vector_store %arg5[%c0_5, %c0_6], %6 {strides = array<i32>} : memref<16x128xf32, #tpu.memory_space<vmem>>, vector<16x128xf32>,
    return
  }
  func.func @transform_0(%arg0: i32, %arg1: i32) -> (i32, i32) {
    %c0_i32 = arith.constant 0 : i32
    %c0_i32_0 = arith.constant 0 : i32
    return %arg1, %c0_i32 : i32, i32
  }
  func.func @transform_1(%arg0: i32, %arg1: i32) -> (i32, i32) {
    %c0_i32 = arith.constant 0 : i32
    %c0_i32_0 = arith.constant 0 : i32
    return %c0_i32, %arg0 : i32, i32
  }
  func.func @transform_2(%arg0: i32, %arg1: i32) -> (i32, i32) {
    %c0_i32 = arith.constant 0 : i32
    %c0_i32_0 = arith.constant 0 : i32
    return %c0_i32, %arg0 : i32, i32
  }
  func.func @transform_3(%arg0: i32, %arg1: i32) -> (i32, i32) {
    %c0_i32 = arith.constant 0 : i32
    return %arg1, %arg0 : i32, i32
  }
}

</mosaic_0001>

<bundles_post_ra>
// kernel: tpu_custom_call.1
= control target key start
LH: loop header
LB: loop body
LE: loop exit
PB: predicated region body
PF: predicated region fallthrough
CT: control target
= control target key end

     0   :  { %8 = vsyncpa [#allocation3], 0  ;;  %s307_s0 = inlined_call_operand.hbm [shape: f32[16,32], index: 0, kind: input, shape index: {}]   ;;  %s308_s1 = inlined_call_operand.hbm [shape: bf16[32,128], index: 1, kind: input, shape index: {}]   ;;  %s309_s2 = inlined_call_operand.vmem [shape: f32[1,128], index: 2, kind: input, shape index: {}]   ;;  %s310_s3 = inlined_call_operand.hbm [shape: f32[16,128], index: 3, kind: output, shape index: {}]  }
   0x1   :  { %9 = vsyncpa [#allocation6], 0 }
   0x2   :  { %10 = vsyncpa [#allocation4], 0  ;;  %s233_s12 = smov [#allocation2]   ;;  %s161_s16 = scalar_lea.hbm %s307_s0, 256 }
   0x3   :  { %s16_s13 = sshll.u32 %s233_s12, 4  ;;  %p162_p0 = scmp.ne.s32.totalorder %s307_s0, %s161_s16  ;;  %s17_s13 = int_to_ptr.vmem [resolvable:$true] %s16_s13 }
   0x4   :  { %p165_p1 = scmp.lt.u32.totalorder %s161_s16, %s307_s0 }
   0x6   :  { %p167_p2 = pnand %p165_p1, %p162_p0 }
   0x8   :  { %170 = shalt.err (!%p167_p2)
}
   0x9   :  { %s171_s21 = scalar_lea.vmem %s17_s13, 256  ;;  %p176_p4 = scmp.lt.s32.totalorder %s17_s13, %s17_s13 }
   0xa   :  { %p172_p3 = scmp.ne.s32.totalorder %s17_s13, %s171_s21  ;;  %p177_p5 = scmp.lt.s32.totalorder %s171_s21, %s171_s21 }
   0xc   :  { %p178_p6 = por %p177_p5, %p176_p4 }
   0xe   :  { %p179_p7 = pnand %p178_p6, %p172_p3 }
  0x10   :  { %182 = shalt.err (!%p179_p7)
}
  0x11   :  { %s234_s22 = smov 128   ;;  %s235_s23 = smov 8  }
  0x12   :  { %22 = dma.hbm_to_vmem [thread:$0]  %s307_s0, 256, %s17_s13, [#allocation3], %s234_s22, %s234_s22, %s235_s23  }
  0x13   :  { %s236_s26 = smov [#allocation5]   ;;  %s183_s30 = scalar_lea.hbm %s308_s1, 256 }
  0x14   :  { %s28_s27 = sshll.u32 %s236_s26, 4  ;;  %p184_p8 = scmp.ne.s32.totalorder %s308_s1, %s183_s30  ;;  %s29_s27 = int_to_ptr.vmem [resolvable:$true] %s28_s27 }
  0x15   :  { %p187_p9 = scmp.lt.u32.totalorder %s183_s30, %s308_s1 }
  0x17   :  { %p189_p10 = pnand %p187_p9, %p184_p8 }
  0x19   :  { %192 = shalt.err (!%p189_p10)
}
  0x1a   :  { %s193_s8 = scalar_lea.vmem %s29_s27, 256  ;;  %p198_p12 = scmp.lt.s32.totalorder %s29_s27, %s29_s27 }
  0x1b   :  { %p194_p11 = scmp.ne.s32.totalorder %s29_s27, %s193_s8  ;;  %p199_p13 = scmp.lt.s32.totalorder %s193_s8, %s193_s8 }
  0x1d   :  { %p200_p0 = por %p199_p13, %p198_p12 }
  0x1f   :  { %p201_p1 = pnand %p200_p0, %p194_p11 }
  0x21   :  { %204 = shalt.err (!%p201_p1)
}
  0x22   :  { %s237_s0 = smov 64   ;;  %s238_s9 = smov 4  }
  0x23   :  { %34 = dma.hbm_to_vmem [thread:$0]  %s308_s1, 256, %s29_s27, [#allocation6], %s237_s0, %s237_s0, %s238_s9  }
  0x24   :  { %227 = dma.done.wait [#allocation3], 256  }
  0x25   :  { %228 = vsyncadd [#allocation3], 4294967040 }
  0x26   :  { %229 = dma.done.wait [#allocation6], 256  }
  0x27   :  { %230 = vsyncadd [#allocation6], 4294967040  ;;  %v239_v0 = vmov 0.0   ;;  %vm240_vm0 = vmmov 0   ;;  %v159_v1 = vld [vmem:[#allocation5] sm:$0xff]   ;;  %v160_v2 = vld [vmem:[#allocation5 + $0x8] sm:$0xff]  }
  0x28   :  { %142 = vmatprep.subr.bf16.mxu0 %v239_v0  ;;  %146 = vmatprep.mubr.msk.bf16.mxu0 %vm240_vm0, %v239_v0  ;;  %v44_v3 = vld [vmem:[#allocation2] sm:$0xff]  ;;  %v45_v4 = vld [vmem:[#allocation2 + $0x8] sm:$0xff]  ;;  %vm70_vm1 = vcmask 261120   ;;  %s241_s13 = smov [#allocation7]  }
  0x29   :  { %143 = vmatpush3.bf16.msra.mxu0 %v159_v1  ;;  %v46_v5 = vpack.c.bf16 %v45_v4, %v44_v3  ;;  %v135_v6 = vld [vmem:[%s309_s2] ss:$0 sm:$0xff]  ;;  %s122_s14 = sshll.u32 %s241_s13, 4  ;;  %s123_s14 = int_to_ptr.vmem [resolvable:$true] %s122_s14 }
  0x2a   :  { %144 = vmatprep.subr.bf16.mxu0 %v239_v0  ;;  %s205_s15 = scalar_lea.vmem %s123_s14, 256  ;;  %p210_p3 = scmp.lt.s32.totalorder %s123_s14, %s123_s14 }
  0x2b   :  { %p206_p2 = scmp.ne.s32.totalorder %s123_s14, %s205_s15  ;;  %p211_p4 = scmp.lt.s32.totalorder %s205_s15, %s205_s15 }
  0x2d   :  { %145 = vmatpush3.bf16.msra.mxu0 %v160_v2  ;;  %p212_p5 = por %p211_p4, %p210_p3 }
  0x2f   :  { %p213_p6 = pnand %p212_p5, %p206_p2 }
  0x30   :  { %147 = vmatmul.mubr.msk.bf16.vlgmr.msra.gmra.mrb[0].mxu0 %vm70_vm1, %v46_v5 }
 0x103   :  { %v108_v7 = vpop.f32.mrb[0].mxu0 }
 0x104   :  { %v109_v8 = vadd.f32 %v135_v6, %v108_v7  ;;  %v148_v9 = vpop.f32.mrb[1].mxu0 }
 0x105   :  { %v111_v10 = vpop.f32.mrb[2].mxu0 }
 0x106   :  { %115 = vst [vmem:[#allocation7] sm:$0xff] %v109_v8  ;;  %v112_v11 = vadd.f32 %v135_v6, %v111_v10  ;;  %v149_v12 = vpop.f32.mrb[3].mxu0 }
 0x108   :  { %116 = vst [vmem:[#allocation7 + $0x8] sm:$0xff] %v112_v11 }
 0x109   :  { %216 = shalt.err (!%p213_p6)
}
 0x10a   :  { %s217_s17 = scalar_lea.hbm %s310_s3, 256 }
 0x10b   :  { %p218_p7 = scmp.ne.s32.totalorder %s310_s3, %s217_s17  ;;  %p221_p8 = scmp.lt.u32.totalorder %s217_s17, %s310_s3 }
 0x10d   :  { %p223_p9 = pnand %p221_p8, %p218_p7 }
 0x10f   :  { %226 = shalt.err (!%p223_p9)
}
 0x110   :  { %128 = dma.vmem_to_hbm [thread:$0]  %s123_s14, 256, %s310_s3, [#allocation4], %s234_s22, %s234_s22, %s235_s23  }
 0x111   :  { %231 = dma.done.wait [#allocation4], 256  }
 0x112   :  { %232 = vsyncadd [#allocation4], 4294967040 }
 0x113   :  { %132 = vsyncpa [#allocation3], 1 }
 0x114   :  { %133 = vsyncpa [#allocation6], 1 }
 0x115   :  { %134 = vsyncpa [#allocation4], 1 }

</bundles_post_ra>
